<compile_context>
chip_gen: v7x
topology: tpu7x:2x2x1
jax: 0.10.0
libtpu: 0.0.40
codegen_flags: <defaults>
</compile_context>

<pallas_src>
import jax
import jax.numpy as jnp
from jax.experimental import pallas as pl
from jax.experimental.pallas import tpu as pltpu


def _round_up(n, m):
    return ((n + m - 1) // m) * m


def mlp_kernel(x_ref,
               w1_ref, b1_ref,
               w2_ref, b2_ref,
               w3_ref, b3_ref,
               w4_ref, b4_ref,
               w5_ref,
               b5_ref,
               o_ref):
    x = x_ref[...]                                          # (1, bm) f32

    # Layer 1 (K=1): pure VPU broadcast multiply-add (outer product).
    h = jnp.maximum(w1_ref[...] * x + b1_ref[...], 0.0)     # (128, bm)

    def dense_relu(h, wt_ref, bt_ref):
        # MXU matmul W^T @ h; inputs in the weight dtype (bf16 or f32),
        # accumulation always f32.  Lane dim of the result is bm (dense).
        acc = jnp.dot(wt_ref[...], h.astype(wt_ref.dtype),
                      preferred_element_type=jnp.float32) + bt_ref[...]
        return jnp.maximum(acc, 0.0)

    h = dense_relu(h, w2_ref, b2_ref)                       # (256, bm)
    h = dense_relu(h, w3_ref, b3_ref)                       # (128, bm)
    h = dense_relu(h, w4_ref, b4_ref)                       # (64, bm)

    # Layer 5 (N=1): VPU multiply + sublane (XLU) reduce; scalar bias in SMEM.
    out = jnp.sum(h * w5_ref[...], axis=0, keepdims=True) + b5_ref[0, 0]
    o_ref[...] = out.astype(o_ref.dtype)                    # (1, bm)


def mlp_forward(x, params, *, block_m=512, mxu_dtype=jnp.bfloat16):
    """x: (B, 1) float32. params: [(W, b)] with W (in, out), b (1, out).

    mxu_dtype: dtype fed to the MXU for the middle matmuls (bfloat16
    recommended on all TPU generations; float32 for exact f32 semantics).
    """
    (w1, b1), (w2, b2), (w3, b3), (w4, b4), (w5, b5) = params

    B = x.shape[0]
    block_m = _round_up(max(block_m, 128), 128)

    # Lane-dense tile: batch on the 128-lane axis, multiple of 128.
    bm = min(block_m, _round_up(B, 128))
    # Ensure >= 2 grid steps for large batches so v7x's 2 TCs both get work.
    if B > 128 and _round_up(B, bm) // bm < 2:
        bm = max(128, _round_up(B, 256) // 2)
    padded = _round_up(B, bm)

    # Transposed (lane-dense) activations: (1, padded) with batch on lanes.
    xt = x.reshape(1, B)
    if padded != B:
        xt = jnp.pad(xt, ((0, 0), (0, padded - B)))

    # Transposed weights/biases so each layer is h_next = W^T @ h + b^T.
    w1t = w1.T                                  # (128, 1)   VPU path, f32
    b1t = b1.T                                  # (128, 1)
    w2t = w2.T.astype(mxu_dtype)                # (256, 128) MXU
    b2t = b2.T                                  # (256, 1)
    w3t = w3.T.astype(mxu_dtype)                # (128, 256) MXU
    b3t = b3.T                                  # (128, 1)
    w4t = w4.T.astype(mxu_dtype)                # (64, 128)  MXU
    b4t = b4.T                                  # (64, 1)
    w5c = w5                                    # (64, 1)    VPU/XLU reduce
    b5s = b5                                    # (1, 1) scalar -> SMEM

    vmem_weights = (w1t, b1t, w2t, b2t, w3t, b3t, w4t, b4t, w5c)

    x_spec = pl.BlockSpec((1, bm), lambda i: (0, i))
    # Full-shape block, same block every grid step -> stays VMEM-resident.
    w_specs = [pl.BlockSpec(p.shape, lambda i: (0, 0)) for p in vmem_weights]
    b5_spec = pl.BlockSpec(memory_space=pltpu.MemorySpace.SMEM)
    out_spec = pl.BlockSpec((1, bm), lambda i: (0, i))

    flops = 2 * padded * (1 * 128 + 128 * 256 + 256 * 128 + 128 * 64 + 64 * 1)
    bytes_accessed = (
        int(xt.size) * xt.dtype.itemsize
        + sum(int(p.size) * p.dtype.itemsize for p in vmem_weights)
        + int(b5s.size) * b5s.dtype.itemsize
        + padded * 4
    )
    cost = pl.CostEstimate(flops=flops, transcendentals=0,
                           bytes_accessed=bytes_accessed)

    out = pl.pallas_call(
        mlp_kernel,
        out_shape=jax.ShapeDtypeStruct((1, padded), jnp.float32),
        grid=(padded // bm,),
        in_specs=[x_spec] + w_specs + [b5_spec],
        out_specs=out_spec,
        compiler_params=pltpu.CompilerParams(
            dimension_semantics=("parallel",)),
        cost_estimate=cost,
    )(xt, *vmem_weights, b5s)

    return out[0, :B].reshape(B, 1)


def init_params(key):
    """Deterministic init mimicking PyTorch's default nn.Linear init
    (uniform(-1/sqrt(fan_in), 1/sqrt(fan_in)) for both W and b)."""
    sizes = [(1, 128), (128, 256), (256, 128), (128, 64), (64, 1)]
    params = []
    for (fan_in, fan_out) in sizes:
        key, kw, kb = jax.random.split(key, 3)
        bound = 1.0 / (fan_in ** 0.5)
        w = jax.random.uniform(kw, (fan_in, fan_out), jnp.float32, -bound, bound)
        b = jax.random.uniform(kb, (1, fan_out), jnp.float32, -bound, bound)
        params.append((w, b))
    return params


def reference_forward(x, params):
    """Exact f32 reference matching the PyTorch module."""
    h = x
    for i, (w, b) in enumerate(params):
        h = h @ w + b
        if i < len(params) - 1:
            h = jnp.maximum(h, 0.0)
    return h


def reference_forward_mxu(x, params, mxu_dtype):
    """Reference mirroring the kernel's reduced-precision MXU inputs."""
    (w1, b1), (w2, b2), (w3, b3), (w4, b4), (w5, b5) = params
    h = jnp.maximum(x * w1 + b1, 0.0)
    for (w, b) in ((w2, b2), (w3, b3), (w4, b4)):
        h = jnp.dot(h.astype(mxu_dtype), w.astype(mxu_dtype),
                    preferred_element_type=jnp.float32) + b
        h = jnp.maximum(h, 0.0)
    return jnp.sum(h * w5.T, axis=-1, keepdims=True) + b5


if __name__ == "__main__":
    key = jax.random.PRNGKey(0)
    key, kx = jax.random.split(key)
    params = init_params(key)

    # 1) Small batch, full-f32 MXU path: exact PyTorch nn.Linear semantics.
    batch = 8
    x = jax.random.uniform(kx, (batch, 1), jnp.float32, 0.0, 10.0)
    out = jax.block_until_ready(mlp_forward(x, params, mxu_dtype=jnp.float32))
    ref = reference_forward(x, params)
    assert out.shape == (batch, 1)
    assert jnp.allclose(out, ref, atol=1e-4, rtol=1e-4), "f32 mismatch vs reference"

    # 2) Ragged batch on the default bf16-MXU path: exercises padding, the
    #    lane-dense multi-step "parallel" grid (>=2 steps for v7x's 2 TCs)
    #    and VMEM-resident weights.
    key, kx2 = jax.random.split(key)
    batch2 = 300
    x2 = jax.random.uniform(kx2, (batch2, 1), jnp.float32, 0.0, 10.0)
    out2 = jax.block_until_ready(mlp_forward(x2, params))
    ref2 = reference_forward_mxu(x2, params, jnp.bfloat16)
    assert out2.shape == (batch2, 1)
    assert jnp.allclose(out2, ref2, atol=5e-3, rtol=5e-3), "bf16 mismatch vs reference"

    print("KERNEL_OK")
</pallas_src>

<mosaic_0001>
module attributes {stable_mosaic.version = 11 : i64} {
  func.func @mlp_kernel(%arg0: i32, %arg1: memref<1x128xf32, #tpu.memory_space<vmem>>, %arg2: memref<128x1xf32, #tpu.memory_space<vmem>>, %arg3: memref<128x1xf32, #tpu.memory_space<vmem>>, %arg4: memref<256x128xf32, #tpu.memory_space<vmem>>, %arg5: memref<256x1xf32, #tpu.memory_space<vmem>>, %arg6: memref<128x256xf32, #tpu.memory_space<vmem>>, %arg7: memref<128x1xf32, #tpu.memory_space<vmem>>, %arg8: memref<64x128xf32, #tpu.memory_space<vmem>>, %arg9: memref<64x1xf32, #tpu.memory_space<vmem>>, %arg10: memref<64x1xf32, #tpu.memory_space<vmem>>, %arg11: memref<1x1xf32, #tpu.memory_space<smem>>, %arg12: memref<1x128xf32, #tpu.memory_space<vmem>>) attributes {dimension_semantics = [#tpu.dimension_semantics<parallel>], iteration_bounds = array<i64: 1>, scalar_prefetch = 0 : i64, scratch_operands = 0 : i64, tpu.core_type = #tpu.core_type<tc>, window_params = [{transform_indices = @transform_0, window_bounds = array<i64: 1, 128>}, {pipeline_mode = #tpu.pipeline_mode<synchronous>, transform_indices = @transform_1, window_bounds = array<i64: 128, 1>}, {pipeline_mode = #tpu.pipeline_mode<synchronous>, transform_indices = @transform_2, window_bounds = array<i64: 128, 1>}, {pipeline_mode = #tpu.pipeline_mode<synchronous>, transform_indices = @transform_3, window_bounds = array<i64: 256, 128>}, {pipeline_mode = #tpu.pipeline_mode<synchronous>, transform_indices = @transform_4, window_bounds = array<i64: 256, 1>}, {pipeline_mode = #tpu.pipeline_mode<synchronous>, transform_indices = @transform_5, window_bounds = array<i64: 128, 256>}, {pipeline_mode = #tpu.pipeline_mode<synchronous>, transform_indices = @transform_6, window_bounds = array<i64: 128, 1>}, {pipeline_mode = #tpu.pipeline_mode<synchronous>, transform_indices = @transform_7, window_bounds = array<i64: 64, 128>}, {pipeline_mode = #tpu.pipeline_mode<synchronous>, transform_indices = @transform_8, window_bounds = array<i64: 64, 1>}, {pipeline_mode = #tpu.pipeline_mode<synchronous>, transform_indices = @transform_9, window_bounds = array<i64: 64, 1>}, {transform_indices = @transform_10, window_bounds = array<i64: 1, 1>}, {transform_indices = @transform_11, window_bounds = array<i64: 1, 128>}]} {
    %c0 = arith.constant 0 : index
    %c0_0 = arith.constant 0 : index
    %0 = vector.load %arg1[%c0, %c0_0] : memref<1x128xf32, #tpu.memory_space<vmem>>, vector<1x128xf32>
    %c0_1 = arith.constant 0 : index
    %c0_2 = arith.constant 0 : index
    %1 = vector.load %arg2[%c0_1, %c0_2] : memref<128x1xf32, #tpu.memory_space<vmem>>, vector<128x1xf32>
    %2 = vector.broadcast %1 : vector<128x1xf32> to vector<128x128xf32>
    %3 = vector.broadcast %0 : vector<1x128xf32> to vector<128x128xf32>
    %4 = arith.mulf %2, %3 : vector<128x128xf32>
    %c0_3 = arith.constant 0 : index
    %c0_4 = arith.constant 0 : index
    %5 = vector.load %arg3[%c0_3, %c0_4] : memref<128x1xf32, #tpu.memory_space<vmem>>, vector<128x1xf32>
    %6 = vector.broadcast %5 : vector<128x1xf32> to vector<128x128xf32>
    %7 = arith.addf %4, %6 : vector<128x128xf32>
    %cst = arith.constant 0.000000e+00 : f32
    %8 = vector.broadcast %cst : f32 to vector<128x128xf32>
    %9 = arith.maximumf %7, %8 : vector<128x128xf32>
    %c0_5 = arith.constant 0 : index
    %c0_6 = arith.constant 0 : index
    %10 = vector.load %arg4[%c0_5, %c0_6] : memref<256x128xf32, #tpu.memory_space<vmem>>, vector<256x128xf32>
    %cst_7 = arith.constant dense<0.000000e+00> : vector<256x128xf32>
    %11 = tpu.matmul %10, %9, %cst_7 {dimension_numbers = #tpu.dot_dimension_numbers<[1], [0], [0], [1], [0, 0, 1, 1], [], []>} : vector<256x128xf32>, vector<128x128xf32>, vector<256x128xf32> -> vector<256x128xf32>
    %c0_8 = arith.constant 0 : index
    %c0_9 = arith.constant 0 : index
    %12 = vector.load %arg5[%c0_8, %c0_9] : memref<256x1xf32, #tpu.memory_space<vmem>>, vector<256x1xf32>
    %13 = vector.broadcast %12 : vector<256x1xf32> to vector<256x128xf32>
    %14 = arith.addf %11, %13 : vector<256x128xf32>
    %cst_10 = arith.constant 0.000000e+00 : f32
    %15 = vector.broadcast %cst_10 : f32 to vector<256x128xf32>
    %16 = arith.maximumf %14, %15 : vector<256x128xf32>
    %c0_11 = arith.constant 0 : index
    %c0_12 = arith.constant 0 : index
    %17 = vector.load %arg6[%c0_11, %c0_12] : memref<128x256xf32, #tpu.memory_space<vmem>>, vector<128x256xf32>
    %cst_13 = arith.constant dense<0.000000e+00> : vector<128x128xf32>
    %18 = tpu.matmul %17, %16, %cst_13 {dimension_numbers = #tpu.dot_dimension_numbers<[1], [0], [0], [1], [0, 0, 1, 1], [], []>} : vector<128x256xf32>, vector<256x128xf32>, vector<128x128xf32> -> vector<128x128xf32>
    %c0_14 = arith.constant 0 : index
    %c0_15 = arith.constant 0 : index
    %19 = vector.load %arg7[%c0_14, %c0_15] : memref<128x1xf32, #tpu.memory_space<vmem>>, vector<128x1xf32>
    %20 = vector.broadcast %19 : vector<128x1xf32> to vector<128x128xf32>
    %21 = arith.addf %18, %20 : vector<128x128xf32>
    %cst_16 = arith.constant 0.000000e+00 : f32
    %22 = vector.broadcast %cst_16 : f32 to vector<128x128xf32>
    %23 = arith.maximumf %21, %22 : vector<128x128xf32>
    %c0_17 = arith.constant 0 : index
    %c0_18 = arith.constant 0 : index
    %24 = vector.load %arg8[%c0_17, %c0_18] : memref<64x128xf32, #tpu.memory_space<vmem>>, vector<64x128xf32>
    %cst_19 = arith.constant dense<0.000000e+00> : vector<64x128xf32>
    %25 = tpu.matmul %24, %23, %cst_19 {dimension_numbers = #tpu.dot_dimension_numbers<[1], [0], [0], [1], [0, 0, 1, 1], [], []>} : vector<64x128xf32>, vector<128x128xf32>, vector<64x128xf32> -> vector<64x128xf32>
    %c0_20 = arith.constant 0 : index
    %c0_21 = arith.constant 0 : index
    %26 = vector.load %arg9[%c0_20, %c0_21] : memref<64x1xf32, #tpu.memory_space<vmem>>, vector<64x1xf32>
    %27 = vector.broadcast %26 : vector<64x1xf32> to vector<64x128xf32>
    %28 = arith.addf %25, %27 : vector<64x128xf32>
    %cst_22 = arith.constant 0.000000e+00 : f32
    %29 = vector.broadcast %cst_22 : f32 to vector<64x128xf32>
    %30 = arith.maximumf %28, %29 : vector<64x128xf32>
    %c0_23 = arith.constant 0 : index
    %c0_24 = arith.constant 0 : index
    %31 = vector.load %arg10[%c0_23, %c0_24] : memref<64x1xf32, #tpu.memory_space<vmem>>, vector<64x1xf32>
    %32 = vector.broadcast %31 : vector<64x1xf32> to vector<64x128xf32>
    %33 = arith.mulf %30, %32 : vector<64x128xf32>
    %cst_25 = arith.constant dense<0.000000e+00> : vector<128xf32>
    %34 = vector.multi_reduction <add>, %33, %cst_25 [0] : vector<64x128xf32> to vector<128xf32>
    %35 = vector.shape_cast %34 : vector<128xf32> to vector<1x128xf32>
    %c0_26 = arith.constant 0 : index
    %c0_27 = arith.constant 0 : index
    %36 = memref.load %arg11[%c0_26, %c0_27] : memref<1x1xf32, #tpu.memory_space<smem>>
    %37 = vector.broadcast %36 : f32 to vector<1x128xf32>
    %38 = arith.addf %35, %37 : vector<1x128xf32>
    %c0_28 = arith.constant 0 : index
    %c0_29 = arith.constant 0 : index
    %39 = vector.load %arg12[%c0_28, %c0_29] : memref<1x128xf32, #tpu.memory_space<vmem>>, vector<1x128xf32>
    tpu.vector_store %arg12[%c0_28, %c0_29], %38 {strides = array<i32>} : memref<1x128xf32, #tpu.memory_space<vmem>>, vector<1x128xf32>,
    return
  }
  func.func @transform_0(%arg0: i32) -> (i32, i32) {
    %c0_i32 = arith.constant 0 : i32
    %c0_i32_0 = arith.constant 0 : i32
    return %c0_i32, %arg0 : i32, i32
  }
  func.func @transform_1(%arg0: i32) -> (i32, i32) {
    %c0_i32 = arith.constant 0 : i32
    %c0_i32_0 = arith.constant 0 : i32
    %c0_i32_1 = arith.constant 0 : i32
    return %c0_i32, %c0_i32_0 : i32, i32
  }
  func.func @transform_2(%arg0: i32) -> (i32, i32) {
    %c0_i32 = arith.constant 0 : i32
    %c0_i32_0 = arith.constant 0 : i32
    %c0_i32_1 = arith.constant 0 : i32
    return %c0_i32, %c0_i32_0 : i32, i32
  }
  func.func @transform_3(%arg0: i32) -> (i32, i32) {
    %c0_i32 = arith.constant 0 : i32
    %c0_i32_0 = arith.constant 0 : i32
    %c0_i32_1 = arith.constant 0 : i32
    return %c0_i32, %c0_i32_0 : i32, i32
  }
  func.func @transform_4(%arg0: i32) -> (i32, i32) {
    %c0_i32 = arith.constant 0 : i32
    %c0_i32_0 = arith.constant 0 : i32
    %c0_i32_1 = arith.constant 0 : i32
    return %c0_i32, %c0_i32_0 : i32, i32
  }
  func.func @transform_5(%arg0: i32) -> (i32, i32) {
    %c0_i32 = arith.constant 0 : i32
    %c0_i32_0 = arith.constant 0 : i32
    %c0_i32_1 = arith.constant 0 : i32
    return %c0_i32, %c0_i32_0 : i32, i32
  }
  func.func @transform_6(%arg0: i32) -> (i32, i32) {
    %c0_i32 = arith.constant 0 : i32
    %c0_i32_0 = arith.constant 0 : i32
    %c0_i32_1 = arith.constant 0 : i32
    return %c0_i32, %c0_i32_0 : i32, i32
  }
  func.func @transform_7(%arg0: i32) -> (i32, i32) {
    %c0_i32 = arith.constant 0 : i32
    %c0_i32_0 = arith.constant 0 : i32
    %c0_i32_1 = arith.constant 0 : i32
    return %c0_i32, %c0_i32_0 : i32, i32
  }
  func.func @transform_8(%arg0: i32) -> (i32, i32) {
    %c0_i32 = arith.constant 0 : i32
    %c0_i32_0 = arith.constant 0 : i32
    %c0_i32_1 = arith.constant 0 : i32
    return %c0_i32, %c0_i32_0 : i32, i32
  }
  func.func @transform_9(%arg0: i32) -> (i32, i32) {
    %c0_i32 = arith.constant 0 : i32
    %c0_i32_0 = arith.constant 0 : i32
    %c0_i32_1 = arith.constant 0 : i32
    return %c0_i32, %c0_i32_0 : i32, i32
  }
  func.func @transform_10(%arg0: i32) -> (i32, i32) {
    %c0_i32 = arith.constant 0 : i32
    %c0_i32_0 = arith.constant 0 : i32
    %c0_i32_1 = arith.constant 0 : i32
    return %c0_i32, %c0_i32_0 : i32, i32
  }
  func.func @transform_11(%arg0: i32) -> (i32, i32) {
    %c0_i32 = arith.constant 0 : i32
    %c0_i32_0 = arith.constant 0 : i32
    return %c0_i32, %arg0 : i32, i32
  }
}

</mosaic_0001>

<bundles_post_ra>
// kernel: tpu_custom_call.1
= control target key start
LH: loop header
LB: loop body
LE: loop exit
PB: predicated region body
PF: predicated region fallthrough
CT: control target
= control target key end

     0   :  { %v1730_v2 = vmov 0   ;;  %s2404_s0 = inlined_call_operand.vmem [shape: f32[1,128], index: 0, kind: input, shape index: {}]   ;;  %s2405_s1 = inlined_call_operand.vmem [shape: f32[128,1], index: 1, kind: input, shape index: {}]   ;;  %s2406_s2 = inlined_call_operand.vmem [shape: f32[128,1], index: 2, kind: input, shape index: {}]   ;;  %s2407_s3 = inlined_call_operand.vmem [shape: f32[256,128], index: 3, kind: input, shape index: {}]   ;;  %s2408_s4 = inlined_call_operand.vmem [shape: f32[256,1], index: 4, kind: input, shape index: {}]   ;;  %s2409_s5 = inlined_call_operand.vmem [shape: f32[128,256], index: 5, kind: input, shape index: {}]   ;;  %s2410_s6 = inlined_call_operand.vmem [shape: f32[128,1], index: 6, kind: input, shape index: {}]   ;;  %s2411_s7 = inlined_call_operand.vmem [shape: f32[64,128], index: 7, kind: input, shape index: {}]   ;;  %s2412_s8 = inlined_call_operand.vmem [shape: f32[64,1], index: 8, kind: input, shape index: {}]   ;;  %s2413_s9 = inlined_call_operand.vmem [shape: f32[64,1], index: 9, kind: input, shape index: {}]   ;;  %s2414_s10 = inlined_call_operand.<no memory space> [shape: f32[1,1], index: 10, kind: input, shape index: {}]   ;;  %s2415_s11 = inlined_call_operand.hbm [shape: f32[1,128], index: 11, kind: output, shape index: {}]  }
   0x1   :  { %v159_v0 = vld [vmem:[%s2406_s2] sm:$0xff]  ;;  %1705 = vset.pattern.permute.xlu1 %v1730_v2  ;;  %1704 = vset.pattern.permute.xlu0 %v1730_v2  ;;  %v160_v3 = vld [vmem:[%s2406_s2 + $0x8] sm:$0xff]  ;;  %v44_v5 = vld [vmem:[%s2405_s1 + $0x18] sm:$0xff] }
   0x2   :  { %v41_v1 = vld [vmem:[%s2405_s1] sm:$0xff]  ;;  %177 = vperm.xlu1 %1705, %v159_v0   ;;  %v42_v4 = vld [vmem:[%s2405_s1 + $0x8] sm:$0xff]  ;;  %v43_v6 = vld [vmem:[%s2405_s1 + $0x10] sm:$0xff] }
   0x3   :  { %59 = vperm.xlu0 %1704, %v41_v1   ;;  %v162_v7 = vld [vmem:[%s2406_s2 + $0x18] sm:$0xff]  ;;  %v161_v8 = vld [vmem:[%s2406_s2 + $0x10] sm:$0xff]  ;;  %v46_v9 = vld [vmem:[%s2405_s1 + $0x28] sm:$0xff] }
   0x4   :  { %v45_v10 = vld [vmem:[%s2405_s1 + $0x20] sm:$0xff]  ;;  %v164_v11 = vld [vmem:[%s2406_s2 + $0x28] sm:$0xff]  ;;  %v48_v13 = vld [vmem:[%s2405_s1 + $0x38] sm:$0xff] }
   0x5   :  { %v163_v12 = vld [vmem:[%s2406_s2 + $0x20] sm:$0xff]  ;;  %v47_v14 = vld [vmem:[%s2405_s1 + $0x30] sm:$0xff] }
   0x6   :  { %182 = vperm.xlu1 %1705, %v160_v3  }
   0x7   :  { %64 = vperm.xlu0 %1704, %v42_v4  }
   0xa   :  { %74 = vperm.xlu1 %1705, %v44_v5  }
   0xb   :  { %69 = vperm.xlu0 %1704, %v43_v6  }
   0xe   :  { %192 = vperm.xlu1 %1705, %v162_v7  }
   0xf   :  { %187 = vperm.xlu0 %1704, %v161_v8  }
  0x12   :  { %84 = vperm.xlu1 %1705, %v46_v9  }
  0x13   :  { %79 = vperm.xlu0 %1704, %v45_v10  }
  0x16   :  { %202 = vperm.xlu1 %1705, %v164_v11  }
  0x17   :  { %197 = vperm.xlu0 %1704, %v163_v12  }
  0x18   :  { %17 = vsyncpa [#allocation4], 0  ;;  %v166_v15 = vld [vmem:[%s2406_s2 + $0x38] sm:$0xff]  ;;  %v165_v16 = vld [vmem:[%s2406_s2 + $0x30] sm:$0xff]  ;;  %s1731_s28 = smov [#allocation3]  }
  0x19   :  { %v50_v17 = vld [vmem:[%s2405_s1 + $0x48] sm:$0xff]  ;;  %v49_v18 = vld [vmem:[%s2405_s1 + $0x40] sm:$0xff]  ;;  %v52_v21 = vld [vmem:[%s2405_s1 + $0x58] sm:$0xff]  ;;  %s1305_s29 = sshll.u32 %s1731_s28, 4  ;;  %s1306_s29 = int_to_ptr.vmem [resolvable:$true] %s1305_s29 }
  0x1a   :  { %94 = vperm.xlu1 %1705, %v48_v13   ;;  %v168_v19 = vld [vmem:[%s2406_s2 + $0x48] sm:$0xff]  ;;  %v167_v20 = vld [vmem:[%s2406_s2 + $0x40] sm:$0xff]  ;;  %v51_v22 = vld [vmem:[%s2405_s1 + $0x50] sm:$0xff]  ;;  %s1706_s30 = scalar_lea.vmem %s1306_s29, 16  ;;  %p1711_p1 = scmp.lt.s32.totalorder %s1306_s29, %s1306_s29 }
  0x1b   :  { %89 = vperm.xlu0 %1704, %v47_v14   ;;  %v170_v23 = vld [vmem:[%s2406_s2 + $0x58] sm:$0xff]  ;;  %v169_v24 = vld [vmem:[%s2406_s2 + $0x50] sm:$0xff]  ;;  %v54_v25 = vld [vmem:[%s2405_s1 + $0x68] sm:$0xff]  ;;  %p1707_p0 = scmp.ne.s32.totalorder %s1306_s29, %s1706_s30 }
  0x1c   :  { %v53_v26 = vld [vmem:[%s2405_s1 + $0x60] sm:$0xff]  ;;  %v172_v27 = vld [vmem:[%s2406_s2 + $0x68] sm:$0xff]  ;;  %v56_v29 = vld [vmem:[%s2405_s1 + $0x78] sm:$0xff] }
  0x1d   :  { %v171_v28 = vld [vmem:[%s2406_s2 + $0x60] sm:$0xff]  ;;  %v55_v30 = vld [vmem:[%s2405_s1 + $0x70] sm:$0xff]  ;;  %v174_v31 = vld [vmem:[%s2406_s2 + $0x78] sm:$0xff] }
  0x1e   :  { %212 = vperm.xlu1 %1705, %v166_v15   ;;  %v173_v32 = vld [vmem:[%s2406_s2 + $0x70] sm:$0xff]  ;;  %v336_v33 = vld [vmem:[%s2408_s4 + $0x88] sm:$0xff]  ;;  %v335_v34 = vld [vmem:[%s2408_s4 + $0x80] sm:$0xff] }
  0x1f   :  { %207 = vperm.xlu0 %1704, %v165_v16   ;;  %v320_v35 = vld [vmem:[%s2408_s4 + $0x8] sm:$0xff]  ;;  %v319_v36 = vld [vmem:[%s2408_s4] sm:$0xff]  ;;  %v338_v38 = vld [vmem:[%s2408_s4 + $0x98] sm:$0xff] }
  0x20   :  { %v287_v37 = vld [vmem:[%s2407_s3] sm:$0xff]  ;;  %v337_v39 = vld [vmem:[%s2408_s4 + $0x90] sm:$0xff]  ;;  %v322_v40 = vld [vmem:[%s2408_s4 + $0x18] sm:$0xff] }
  0x21   :  { %1498 = vmatprep.mubr.f32.mxu0 %v287_v37  ;;  %v321_v41 = vld [vmem:[%s2408_s4 + $0x10] sm:$0xff]  ;;  %v340_v42 = vld [vmem:[%s2408_s4 + $0xa8] sm:$0xff]  ;;  %v339_v43 = vld [vmem:[%s2408_s4 + $0xa0] sm:$0xff] }
  0x22   :  { %104 = vperm.xlu1 %1705, %v50_v17   ;;  %v324_v44 = vld [vmem:[%s2408_s4 + $0x28] sm:$0xff]  ;;  %v323_v45 = vld [vmem:[%s2408_s4 + $0x20] sm:$0xff]  ;;  %v342_v46 = vld [vmem:[%s2408_s4 + $0xb8] sm:$0xff] }
  0x23   :  { %99 = vperm.xlu0 %1704, %v49_v18   ;;  %v341_v47 = vld [vmem:[%s2408_s4 + $0xb0] sm:$0xff]  ;;  %v326_v48 = vld [vmem:[%s2408_s4 + $0x38] sm:$0xff]  ;;  %v344_v50 = vld [vmem:[%s2408_s4 + $0xc8] sm:$0xff] }
  0x24   :  { %v325_v49 = vld [vmem:[%s2408_s4 + $0x30] sm:$0xff]  ;;  %v343_v51 = vld [vmem:[%s2408_s4 + $0xc0] sm:$0xff]  ;;  %v328_v52 = vld [vmem:[%s2408_s4 + $0x48] sm:$0xff] }
  0x25   :  { %v327_v53 = vld [vmem:[%s2408_s4 + $0x40] sm:$0xff]  ;;  %v346_v54 = vld [vmem:[%s2408_s4 + $0xd8] sm:$0xff]  ;;  %v345_v55 = vld [vmem:[%s2408_s4 + $0xd0] sm:$0xff] }
  0x26   :  { %222 = vperm.xlu1 %1705, %v168_v19   ;;  %v330_v56 = vld [vmem:[%s2408_s4 + $0x58] sm:$0xff]  ;;  %v329_v57 = vld [vmem:[%s2408_s4 + $0x50] sm:$0xff]  ;;  %v348_v58 = vld [vmem:[%s2408_s4 + $0xe8] sm:$0xff] }
  0x27   :  { %217 = vperm.xlu0 %1704, %v167_v20   ;;  %v347_v59 = vld [vmem:[%s2408_s4 + $0xe0] sm:$0xff]  ;;  %v332_v60 = vld [vmem:[%s2408_s4 + $0x68] sm:$0xff]  ;;  %v350_v62 = vld [vmem:[%s2408_s4 + $0xf8] sm:$0xff] }
  0x28   :  { %v331_v61 = vld [vmem:[%s2408_s4 + $0x60] sm:$0xff]  ;;  %v349_v63 = vld [vmem:[%s2408_s4 + $0xf0] sm:$0xff]  ;;  %v334_v0 = vld [vmem:[%s2408_s4 + $0x78] sm:$0xff] }
  0x29   :  { %v333_v1 = vld [vmem:[%s2408_s4 + $0x70] sm:$0xff]  ;;  %v1990_v2 = vld [vmem:[%s2404_s0] ss:$0 sm:$0xff]  ;;  %v801_v3 = vld [vmem:[%s2410_s6 + $0x8] sm:$0xff] }
  0x2a   :  { %114 = vperm.xlu1 %1705, %v52_v21   ;;  %v800_v4 = vld [vmem:[%s2410_s6] sm:$0xff]  ;;  %v803_v8 = vld [vmem:[%s2410_s6 + $0x18] sm:$0xff]  ;;  %v802_v9 = vld [vmem:[%s2410_s6 + $0x10] sm:$0xff] }
  0x2b   :  { %109 = vperm.xlu0 %1704, %v51_v22   ;;  %v805_v14 = vld [vmem:[%s2410_s6 + $0x28] sm:$0xff]  ;;  %v804_v15 = vld [vmem:[%s2410_s6 + $0x20] sm:$0xff]  ;;  %v807_v21 = vld [vmem:[%s2410_s6 + $0x38] sm:$0xff] }
  0x2c   :  { %v806_v22 = vld [vmem:[%s2410_s6 + $0x30] sm:$0xff]  ;;  %v811_v37 = vld [vmem:[%s2410_s6 + $0x58] sm:$0xff] }
  0x2e   :  { %232 = vperm.xlu1 %1705, %v170_v23  }
  0x2f   :  { %227 = vperm.xlu0 %1704, %v169_v24  }
  0x32   :  { %124 = vperm.xlu1 %1705, %v54_v25  }
  0x33   :  { %119 = vperm.xlu0 %1704, %v53_v26  }
  0x36   :  { %242 = vperm.xlu1 %1705, %v172_v27  }
  0x37   :  { %237 = vperm.xlu0 %1704, %v171_v28  }
  0x3a   :  { %134 = vperm.xlu1 %1705, %v56_v29  }
  0x3b   :  { %129 = vperm.xlu0 %1704, %v55_v30   ;;  %v809_v30 = vld [vmem:[%s2410_s6 + $0x48] sm:$0xff] }
  0x3e   :  { %252 = vperm.xlu1 %1705, %v174_v31   ;;  %v808_v31 = vld [vmem:[%s2410_s6 + $0x40] sm:$0xff] }
  0x3f   :  { %247 = vperm.xlu0 %1704, %v173_v32  }
  0x42   :  { %438 = vperm.xlu1 %1705, %v336_v33  }
  0x43   :  { %433 = vperm.xlu0 %1704, %v335_v34  }
  0x46   :  { %358 = vperm.xlu1 %1705, %v320_v35  }
  0x47   :  { %353 = vperm.xlu0 %1704, %v319_v36  }
  0x4a   :  { %448 = vperm.xlu1 %1705, %v338_v38   ;;  %v810_v38 = vld [vmem:[%s2410_s6 + $0x50] sm:$0xff] }
  0x4b   :  { %443 = vperm.xlu0 %1704, %v337_v39  }
  0x4e   :  { %368 = vperm.xlu1 %1705, %v322_v40  }
  0x4f   :  { %363 = vperm.xlu0 %1704, %v321_v41  }
  0x52   :  { %458 = vperm.xlu1 %1705, %v340_v42  }
  0x53   :  { %453 = vperm.xlu0 %1704, %v339_v43  }
  0x56   :  { %378 = vperm.xlu1 %1705, %v324_v44  }
  0x57   :  { %373 = vperm.xlu0 %1704, %v323_v45   ;;  %v813_v45 = vld [vmem:[%s2410_s6 + $0x68] sm:$0xff] }
  0x5a   :  { %468 = vperm.xlu1 %1705, %v342_v46   ;;  %v812_v46 = vld [vmem:[%s2410_s6 + $0x60] sm:$0xff] }
  0x5b   :  { %463 = vperm.xlu0 %1704, %v341_v47  }
  0x5e   :  { %388 = vperm.xlu1 %1705, %v326_v48  }
  0x5f   :  { %383 = vperm.xlu0 %1704, %v325_v49  }
  0x62   :  { %478 = vperm.xlu1 %1705, %v344_v50  }
  0x63   :  { %473 = vperm.xlu0 %1704, %v343_v51  }
  0x66   :  { %398 = vperm.xlu1 %1705, %v328_v52   ;;  %v815_v52 = vld [vmem:[%s2410_s6 + $0x78] sm:$0xff] }
  0x67   :  { %393 = vperm.xlu0 %1704, %v327_v53   ;;  %v814_v53 = vld [vmem:[%s2410_s6 + $0x70] sm:$0xff] }
  0x6a   :  { %488 = vperm.xlu1 %1705, %v346_v54  }
  0x6b   :  { %483 = vperm.xlu0 %1704, %v345_v55  }
  0x6e   :  { %408 = vperm.xlu1 %1705, %v330_v56  }
  0x6f   :  { %403 = vperm.xlu0 %1704, %v329_v57  }
  0x72   :  { %498 = vperm.xlu1 %1705, %v348_v58  }
  0x73   :  { %493 = vperm.xlu0 %1704, %v347_v59  }
  0x76   :  { %418 = vperm.xlu1 %1705, %v332_v60   ;;  %v1066_v60 = vld [vmem:[%s2412_s8 + $0x8] sm:$0xff] }
  0x77   :  { %413 = vperm.xlu0 %1704, %v331_v61   ;;  %v1065_v61 = vld [vmem:[%s2412_s8] sm:$0xff] }
  0x7a   :  { %508 = vperm.xlu1 %1705, %v350_v62  }
  0x7b   :  { %503 = vperm.xlu0 %1704, %v349_v63  }
  0x7e   :  { %428 = vperm.xlu1 %1705, %v334_v0  }
  0x7f   :  { %423 = vperm.xlu0 %1704, %v333_v1  }
  0x81   :  { %v178_v5 = vpop.permute.xlu1 %177 }
  0x82   :  { %v60_v6 = vpop.permute.xlu0 %59  ;;  %823 = vperm.xlu1 %1705, %v801_v3  }
  0x83   :  { %v143_v7 = vmul.f32 %v1990_v2, %v60_v6  ;;  %818 = vperm.xlu0 %1704, %v800_v4   ;;  %v1068_v4 = vld [vmem:[%s2412_s8 + $0x18] sm:$0xff] }
  0x85   :  { %v183_v10 = vpop.permute.xlu1 %182  ;;  %v255_v12 = vadd.f32 %v178_v5, %v143_v7  ;;  %v1067_v5 = vld [vmem:[%s2412_s8 + $0x10] sm:$0xff] }
  0x86   :  { %v65_v11 = vpop.permute.xlu0 %64  ;;  %833 = vperm.xlu1 %1705, %v803_v8  }
  0x87   :  { %v144_v13 = vmul.f32 %v1990_v2, %v65_v11  ;;  %828 = vperm.xlu0 %1704, %v802_v9   ;;  %v271_v19 = vmax.f32 %v255_v12, 0.0  ;;  %v1227_v12 = vld [vmem:[%s2413_s9 + $0x8] sm:$0xff] }
  0x89   :  { %v256_v16 = vadd.f32 %v183_v10, %v144_v13  ;;  %v75_v17 = vpop.permute.xlu1 %74  ;;  %v1226_v13 = vld [vmem:[%s2413_s9] sm:$0xff] }
  0x8a   :  { %v70_v18 = vpop.permute.xlu0 %69  ;;  %843 = vperm.xlu1 %1705, %v805_v14   ;;  %v146_v23 = vmul.f32 %v1990_v2, %v75_v17 }
  0x8b   :  { %v272_v20 = vmax.f32 %v256_v16, 0.0  ;;  %838 = vperm.xlu0 %1704, %v804_v15   ;;  %v145_v24 = vmul.f32 %v1990_v2, %v70_v18 }
  0x8d   :  { %v1590_v25 = vpack.c.bf16 %v272_v20, %v271_v19  ;;  %v193_v26 = vpop.permute.xlu1 %192  ;;  %v1228_v19 = vld [vmem:[%s2413_s9 + $0x10] sm:$0xff]  ;;  %v1069_v20 = vld [vmem:[%s2412_s8 + $0x20] sm:$0xff] }
  0x8e   :  { %v188_v27 = vpop.permute.xlu0 %187  ;;  %v258_v28 = vadd.f32 %v193_v26, %v146_v23  ;;  %853 = vperm.xlu1 %1705, %v807_v21  }
  0x8f   :  { %v257_v29 = vadd.f32 %v188_v27, %v145_v24  ;;  %848 = vperm.xlu0 %1704, %v806_v22   ;;  %1591 = vmatprep.subr.bf16.mxu0 %v1590_v25  ;;  %v1229_v27 = vld [vmem:[%s2413_s9 + $0x18] sm:$0xff] }
  0x90   :  { %v274_v32 = vmax.f32 %v258_v28, 0.0  ;;  %1593 = vmatpush3.bf16.msra.mxu0 %v1590_v25  ;;  %v1070_v28 = vld [vmem:[%s2412_s8 + $0x28] sm:$0xff] }
  0x91   :  { %v273_v33 = vmax.f32 %v257_v29, 0.0  ;;  %v85_v34 = vpop.permute.xlu1 %84 }
  0x92   :  { %v80_v35 = vpop.permute.xlu0 %79  ;;  %863 = vperm.xlu1 %1705, %v809_v30   ;;  %v148_v39 = vmul.f32 %v1990_v2, %v85_v34  ;;  %v1230_v34 = vld [vmem:[%s2413_s9 + $0x20] sm:$0xff] }
  0x93   :  { %v1594_v36 = vpack.c.bf16 %v274_v32, %v273_v33  ;;  %858 = vperm.xlu0 %1704, %v808_v31   ;;  %v147_v40 = vmul.f32 %v1990_v2, %v80_v35  ;;  %v1071_v35 = vld [vmem:[%s2412_s8 + $0x30] sm:$0xff] }
  0x95   :  { %1595 = vmatprep.subr.bf16.mxu0 %v1594_v36  ;;  %v203_v41 = vpop.permute.xlu1 %202 }
  0x96   :  { %v198_v42 = vpop.permute.xlu0 %197  ;;  %1597 = vmatpush3.bf16.msra.mxu0 %v1594_v36  ;;  %v260_v43 = vadd.f32 %v203_v41, %v148_v39  ;;  %873 = vperm.xlu1 %1705, %v811_v37  }
  0x97   :  { %v259_v44 = vadd.f32 %v198_v42, %v147_v40  ;;  %868 = vperm.xlu0 %1704, %v810_v38   ;;  %v1231_v42 = vld [vmem:[%s2413_s9 + $0x28] sm:$0xff] }
  0x98   :  { %v276_v47 = vmax.f32 %v260_v43, 0.0  ;;  %v1072_v43 = vld [vmem:[%s2412_s8 + $0x38] sm:$0xff] }
  0x99   :  { %v275_v48 = vmax.f32 %v259_v44, 0.0  ;;  %v95_v49 = vpop.permute.xlu1 %94 }
  0x9a   :  { %v90_v50 = vpop.permute.xlu0 %89  ;;  %883 = vperm.xlu1 %1705, %v813_v45   ;;  %v150_v54 = vmul.f32 %v1990_v2, %v95_v49  ;;  %v1233_v49 = vld [vmem:[%s2413_s9 + $0x38] sm:$0xff] }
  0x9b   :  { %v1598_v51 = vpack.c.bf16 %v276_v47, %v275_v48  ;;  %878 = vperm.xlu0 %1704, %v812_v46   ;;  %v149_v55 = vmul.f32 %v1990_v2, %v90_v50  ;;  %v1232_v50 = vld [vmem:[%s2413_s9 + $0x30] sm:$0xff] }
  0x9d   :  { %1599 = vmatprep.subr.bf16.mxu0 %v1598_v51  ;;  %v213_v56 = vpop.permute.xlu1 %212 }
  0x9e   :  { %v208_v57 = vpop.permute.xlu0 %207  ;;  %1601 = vmatpush3.bf16.msra.mxu0 %v1598_v51  ;;  %v262_v58 = vadd.f32 %v213_v56, %v150_v54  ;;  %893 = vperm.xlu1 %1705, %v815_v52  }
  0x9f   :  { %v261_v59 = vadd.f32 %v208_v57, %v149_v55  ;;  %888 = vperm.xlu0 %1704, %v814_v53  }
  0xa0   :  { %v278_v62 = vmax.f32 %v262_v58, 0.0 }
  0xa1   :  { %v277_v63 = vmax.f32 %v261_v59, 0.0  ;;  %v105_v0 = vpop.permute.xlu1 %104 }
  0xa2   :  { %v100_v1 = vpop.permute.xlu0 %99  ;;  %1080 = vperm.xlu1 %1705, %v1066_v60   ;;  %v152_v6 = vmul.f32 %v1990_v2, %v105_v0  ;;  %v288_v60 = vld [vmem:[%s2407_s3 + $0x8] sm:$0xff]  ;;  %v293_v0 = vld [vmem:[%s2407_s3 + $0x30] sm:$0xff] }
  0xa3   :  { %v1602_v3 = vpack.c.bf16 %v278_v62, %v277_v63  ;;  %1075 = vperm.xlu0 %1704, %v1065_v61   ;;  %v151_v7 = vmul.f32 %v1990_v2, %v100_v1  ;;  %v290_v61 = vld [vmem:[%s2407_s3 + $0x18] sm:$0xff]  ;;  %v291_v62 = vld [vmem:[%s2407_s3 + $0x20] sm:$0xff]  ;;  %v292_v63 = vld [vmem:[%s2407_s3 + $0x28] sm:$0xff] }
  0xa4   :  { %v294_v1 = vld [vmem:[%s2407_s3 + $0x38] sm:$0xff] }
  0xa5   :  { %1603 = vmatprep.subr.bf16.mxu0 %v1602_v3  ;;  %v223_v8 = vpop.permute.xlu1 %222 }
  0xa6   :  { %v218_v9 = vpop.permute.xlu0 %217  ;;  %1605 = vmatpush3.bf16.msra.mxu0 %v1602_v3  ;;  %v264_v10 = vadd.f32 %v223_v8, %v152_v6  ;;  %1090 = vperm.xlu1 %1705, %v1068_v4   ;;  %v295_v3 = vld [vmem:[%s2407_s3 + $0x40] sm:$0xff]  ;;  %v296_v4 = vld [vmem:[%s2407_s3 + $0x48] sm:$0xff]  ;;  %v298_v6 = vld [vmem:[%s2407_s3 + $0x58] sm:$0xff] }
  0xa7   :  { %v263_v11 = vadd.f32 %v218_v9, %v151_v7  ;;  %1085 = vperm.xlu0 %1704, %v1067_v5   ;;  %v297_v5 = vld [vmem:[%s2407_s3 + $0x50] sm:$0xff]  ;;  %v299_v7 = vld [vmem:[%s2407_s3 + $0x60] sm:$0xff]  ;;  %v300_v8 = vld [vmem:[%s2407_s3 + $0x68] sm:$0xff] }
  0xa8   :  { %v280_v14 = vmax.f32 %v264_v10, 0.0  ;;  %v301_v9 = vld [vmem:[%s2407_s3 + $0x70] sm:$0xff]  ;;  %v302_v10 = vld [vmem:[%s2407_s3 + $0x78] sm:$0xff] }
  0xa9   :  { %v279_v15 = vmax.f32 %v263_v11, 0.0  ;;  %v115_v16 = vpop.permute.xlu1 %114  ;;  %v303_v11 = vld [vmem:[%s2407_s3 + $0x80] sm:$0xff] }
  0xaa   :  { %v110_v17 = vpop.permute.xlu0 %109  ;;  %1241 = vperm.xlu1 %1705, %v1227_v12   ;;  %v154_v21 = vmul.f32 %v1990_v2, %v115_v16  ;;  %v304_v12 = vld [vmem:[%s2407_s3 + $0x88] sm:$0xff] }
  0xab   :  { %v1606_v18 = vpack.c.bf16 %v280_v14, %v279_v15  ;;  %1236 = vperm.xlu0 %1704, %v1226_v13   ;;  %v153_v22 = vmul.f32 %v1990_v2, %v110_v17  ;;  %v305_v13 = vld [vmem:[%s2407_s3 + $0x90] sm:$0xff]  ;;  %v306_v14 = vld [vmem:[%s2407_s3 + $0x98] sm:$0xff]  ;;  %v307_v15 = vld [vmem:[%s2407_s3 + $0xa0] sm:$0xff] }
  0xac   :  { %v308_v16 = vld [vmem:[%s2407_s3 + $0xa8] sm:$0xff]  ;;  %v309_v17 = vld [vmem:[%s2407_s3 + $0xb0] sm:$0xff] }
  0xad   :  { %1607 = vmatprep.subr.bf16.mxu0 %v1606_v18  ;;  %v233_v23 = vpop.permute.xlu1 %232 }
  0xae   :  { %v228_v24 = vpop.permute.xlu0 %227  ;;  %1609 = vmatpush3.bf16.msra.mxu0 %v1606_v18  ;;  %v266_v25 = vadd.f32 %v233_v23, %v154_v21  ;;  %1246 = vperm.xlu1 %1705, %v1228_v19   ;;  %v310_v18 = vld [vmem:[%s2407_s3 + $0xb8] sm:$0xff]  ;;  %v311_v19 = vld [vmem:[%s2407_s3 + $0xc0] sm:$0xff]  ;;  %v313_v21 = vld [vmem:[%s2407_s3 + $0xd0] sm:$0xff] }
  0xaf   :  { %v265_v26 = vadd.f32 %v228_v24, %v153_v22  ;;  %1095 = vperm.xlu0 %1704, %v1069_v20   ;;  %v312_v20 = vld [vmem:[%s2407_s3 + $0xc8] sm:$0xff]  ;;  %v314_v22 = vld [vmem:[%s2407_s3 + $0xd8] sm:$0xff]  ;;  %v315_v23 = vld [vmem:[%s2407_s3 + $0xe0] sm:$0xff] }
  0xb0   :  { %v282_v29 = vmax.f32 %v266_v25, 0.0  ;;  %v316_v24 = vld [vmem:[%s2407_s3 + $0xe8] sm:$0xff]  ;;  %v317_v25 = vld [vmem:[%s2407_s3 + $0xf0] sm:$0xff] }
  0xb1   :  { %v281_v30 = vmax.f32 %v265_v26, 0.0  ;;  %v125_v31 = vpop.permute.xlu1 %124  ;;  %v318_v26 = vld [vmem:[%s2407_s3 + $0xf8] sm:$0xff] }
  0xb2   :  { %v120_v32 = vpop.permute.xlu0 %119  ;;  %1251 = vperm.xlu1 %1705, %v1229_v27   ;;  %v156_v36 = vmul.f32 %v1990_v2, %v125_v31 }
  0xb3   :  { %v1610_v33 = vpack.c.bf16 %v282_v29, %v281_v30  ;;  %1100 = vperm.xlu0 %1704, %v1070_v28   ;;  %v155_v37 = vmul.f32 %v1990_v2, %v120_v32  ;;  %v769_v29 = vld [vmem:[%s2409_s5 + $0x8] sm:$0xff] }
  0xb4   :  { %960 = vmatprep.mubr.f32.mxu1 %v769_v29 }
  0xb5   :  { %1611 = vmatprep.subr.bf16.mxu0 %v1610_v33  ;;  %v243_v38 = vpop.permute.xlu1 %242 }
  0xb6   :  { %v238_v39 = vpop.permute.xlu0 %237  ;;  %1613 = vmatpush3.bf16.msra.mxu0 %v1610_v33  ;;  %v268_v40 = vadd.f32 %v243_v38, %v156_v36  ;;  %1256 = vperm.xlu1 %1705, %v1230_v34  }
  0xb7   :  { %v267_v41 = vadd.f32 %v238_v39, %v155_v37  ;;  %1105 = vperm.xlu0 %1704, %v1071_v35  }
  0xb8   :  { %v284_v44 = vmax.f32 %v268_v40, 0.0 }
  0xb9   :  { %v283_v45 = vmax.f32 %v267_v41, 0.0  ;;  %v135_v46 = vpop.permute.xlu1 %134 }
  0xba   :  { %v130_v47 = vpop.permute.xlu0 %129  ;;  %1261 = vperm.xlu1 %1705, %v1231_v42   ;;  %v158_v51 = vmul.f32 %v1990_v2, %v135_v46 }
  0xbb   :  { %v1614_v48 = vpack.c.bf16 %v284_v44, %v283_v45  ;;  %1110 = vperm.xlu0 %1704, %v1072_v43   ;;  %v157_v52 = vmul.f32 %v1990_v2, %v130_v47  ;;  %v289_v2 = vld [vmem:[%s2407_s3 + $0x10] sm:$0xff]  ;;  %s1710_s3 = scalar_lea.vmem %s1306_s29, 32 }
  0xbc   :  { %p1712_p2 = scmp.lt.s32.totalorder %s1710_s3, %s1706_s30 }
  0xbd   :  { %1615 = vmatprep.subr.bf16.mxu0 %v1614_v48  ;;  %v253_v53 = vpop.permute.xlu1 %252 }
  0xbe   :  { %v248_v54 = vpop.permute.xlu0 %247  ;;  %1617 = vmatpush3.bf16.msra.mxu0 %v1614_v48  ;;  %v270_v55 = vadd.f32 %v253_v53, %v158_v51  ;;  %1271 = vperm.xlu1 %1705, %v1233_v49   ;;  %p1713_p3 = por %p1712_p2, %p1711_p1 }
  0xbf   :  { %v269_v56 = vadd.f32 %v248_v54, %v157_v52  ;;  %1266 = vperm.xlu0 %1704, %v1232_v50  }
  0xc0   :  { %v286_v57 = vmax.f32 %v270_v55, 0.0  ;;  %p1714_p4 = pnand %p1713_p3, %p1707_p0 }
  0xc1   :  { %v285_v58 = vmax.f32 %v269_v56, 0.0  ;;  %v2197_v27 = vpop.permute.xlu1 %438 }
  0xc2   :  { %v2199_v28 = vpop.permute.xlu0 %433 }
  0xc3   :  { %v1618_v59 = vpack.c.bf16 %v286_v57, %v285_v58 }
  0xc5   :  { %1619 = vmatprep.subr.bf16.mxu0 %v1618_v59  ;;  %v359_v30 = vpop.permute.xlu1 %358 }
  0xc6   :  { %1621 = vmatpush3.bf16.msra.mxu0 %v1618_v59  ;;  %v354_v31 = vpop.permute.xlu0 %353 }
  0xc9   :  { %1499 = vmatmul.mubr.f32.vlgmr.msra.gmra.mrb[0].mxu0 %v288_v60  ;;  %v2204_v32 = vpop.permute.xlu1 %448 }
  0xca   :  { %1501 = vmatprep.mubr.f32.mxu0 %v289_v2  ;;  %v2206_v33 = vpop.permute.xlu0 %443 }
  0xcd   :  { %1502 = vmatmul.mubr.f32.gmra.mrb[2].mxu0 %v290_v61  ;;  %v369_v34 = vpop.permute.xlu1 %368 }
  0xce   :  { %1504 = vmatprep.mubr.f32.mxu0 %v291_v62  ;;  %v364_v35 = vpop.permute.xlu0 %363 }
  0xd1   :  { %1505 = vmatmul.mubr.f32.gmra.mrb[4].mxu0 %v292_v63  ;;  %v2208_v36 = vpop.permute.xlu1 %458 }
  0xd2   :  { %1507 = vmatprep.mubr.f32.mxu0 %v293_v0  ;;  %v2210_v37 = vpop.permute.xlu0 %453 }
  0xd5   :  { %1508 = vmatmul.mubr.f32.gmra.mrb[6].mxu0 %v294_v1  ;;  %v379_v38 = vpop.permute.xlu1 %378 }
  0xd6   :  { %1510 = vmatprep.mubr.f32.mxu0 %v295_v3  ;;  %v374_v39 = vpop.permute.xlu0 %373 }
  0xd9   :  { %1511 = vmatmul.mubr.f32.gmra.mrb[8].mxu0 %v296_v4  ;;  %v2212_v40 = vpop.permute.xlu1 %468 }
  0xda   :  { %1513 = vmatprep.mubr.f32.mxu0 %v297_v5  ;;  %v2214_v41 = vpop.permute.xlu0 %463 }
  0xdd   :  { %1514 = vmatmul.mubr.f32.gmra.mrb[10].mxu0 %v298_v6  ;;  %v389_v42 = vpop.permute.xlu1 %388 }
  0xde   :  { %1516 = vmatprep.mubr.f32.mxu0 %v299_v7  ;;  %v384_v43 = vpop.permute.xlu0 %383 }
  0xe1   :  { %1517 = vmatmul.mubr.f32.gmra.mrb[12].mxu0 %v300_v8  ;;  %v2216_v44 = vpop.permute.xlu1 %478 }
  0xe2   :  { %1519 = vmatprep.mubr.f32.mxu0 %v301_v9  ;;  %v2218_v45 = vpop.permute.xlu0 %473 }
  0xe5   :  { %1520 = vmatmul.mubr.f32.gmra.mrb[14].mxu0 %v302_v10  ;;  %v399_v46 = vpop.permute.xlu1 %398 }
  0xe6   :  { %1522 = vmatprep.mubr.f32.mxu0 %v303_v11  ;;  %v394_v47 = vpop.permute.xlu0 %393 }
  0xe9   :  { %1523 = vmatmul.mubr.f32.gmra.mrb[16].mxu0 %v304_v12  ;;  %v2220_v48 = vpop.permute.xlu1 %488 }
  0xea   :  { %1525 = vmatprep.mubr.f32.mxu0 %v305_v13  ;;  %v2222_v49 = vpop.permute.xlu0 %483 }
  0xed   :  { %1526 = vmatmul.mubr.f32.gmra.mrb[18].mxu0 %v306_v14  ;;  %v409_v55 = vpop.permute.xlu1 %408 }
  0xee   :  { %1528 = vmatprep.mubr.f32.mxu0 %v307_v15  ;;  %v404_v58 = vpop.permute.xlu0 %403 }
  0xf1   :  { %1529 = vmatmul.mubr.f32.gmra.mrb[20].mxu0 %v308_v16  ;;  %v2226_v4 = vpop.permute.xlu1 %498 }
  0xf2   :  { %1531 = vmatprep.mubr.f32.mxu0 %v309_v17  ;;  %v2230_v7 = vpop.permute.xlu0 %493 }
  0xf5   :  { %1532 = vmatmul.mubr.f32.gmra.mrb[22].mxu0 %v310_v18  ;;  %v419_v16 = vpop.permute.xlu1 %418 }
  0xf6   :  { %1534 = vmatprep.mubr.f32.mxu0 %v311_v19  ;;  %v414_v19 = vpop.permute.xlu0 %413 }
  0xf9   :  { %1535 = vmatmul.mubr.f32.gmra.mrb[24].mxu0 %v312_v20 }
  0xfa   :  { %1537 = vmatprep.mubr.f32.mxu0 %v313_v21 }
  0xfd   :  { %1538 = vmatmul.mubr.f32.gmra.mrb[26].mxu0 %v314_v22 }
  0xfe   :  { %1540 = vmatprep.mubr.f32.mxu0 %v315_v23 }
 0x101   :  { %1541 = vmatmul.mubr.f32.gmra.mrb[28].mxu0 %v316_v24 }
 0x102   :  { %1543 = vmatprep.mubr.f32.mxu0 %v317_v25 }
 0x105   :  { %1544 = vmatmul.mubr.f32.gmra.mrb[30].mxu0 %v318_v26 }
 0x19c   :  { %v1500_v50 = vpop.f32.mrb[0].mxu0 }
 0x19d   :  { %v583_v51 = vadd.f32 %v1500_v50, %v359_v30  ;;  %v577_v52 = vpop.f32.mrb[1].mxu0 }
 0x19e   :  { %v578_v53 = vadd.f32 %v577_v52, %v354_v31  ;;  %v2236_v31 = vpop.permute.xlu1 %508 }
 0x19f   :  { %v737_v54 = vmax.f32 %v583_v51, 0.0 }
 0x1a0   :  { %v736_v56 = vmax.f32 %v578_v53, 0.0  ;;  %v1503_v57 = vpop.f32.mrb[2].mxu0 }
 0x1a1   :  { %v593_v59 = vadd.f32 %v1503_v57, %v369_v34  ;;  %v587_v60 = vpop.f32.mrb[3].mxu0 }
 0x1a2   :  { %v588_v2 = vadd.f32 %v587_v60, %v364_v35  ;;  %v2224_v61 = vpack.c.bf16 %v737_v54, %v736_v56  ;;  %v429_v53 = vpop.permute.xlu1 %428 }
 0x1a3   :  { %v739_v62 = vmax.f32 %v593_v59, 0.0 }
 0x1a4   :  { %v738_v63 = vmax.f32 %v588_v2, 0.0  ;;  %v1506_v0 = vpop.f32.mrb[4].mxu0 }
 0x1a5   :  { %v603_v1 = vadd.f32 %v1506_v0, %v379_v38  ;;  %v597_v3 = vpop.f32.mrb[5].mxu0  ;;  %v2240_v38 = vpop.permute.xlu0 %503 }
 0x1a6   :  { %v2228_v5 = vpack.c.bf16 %v739_v62, %v738_v63  ;;  %v598_v6 = vadd.f32 %v597_v3, %v374_v39 }
 0x1a7   :  { %v741_v8 = vmax.f32 %v603_v1, 0.0 }
 0x1a8   :  { %v740_v9 = vmax.f32 %v598_v6, 0.0  ;;  %v1509_v10 = vpop.f32.mrb[6].mxu0 }
 0x1a9   :  { %v613_v11 = vadd.f32 %v1509_v10, %v389_v42  ;;  %v607_v12 = vpop.f32.mrb[7].mxu0  ;;  %v424_v56 = vpop.permute.xlu0 %423 }
 0x1aa   :  { %v2232_v13 = vpack.c.bf16 %v741_v8, %v740_v9  ;;  %v608_v14 = vadd.f32 %v607_v12, %v384_v43 }
 0x1ab   :  { %v743_v15 = vmax.f32 %v613_v11, 0.0 }
 0x1ac   :  { %v742_v17 = vmax.f32 %v608_v14, 0.0  ;;  %v1512_v18 = vpop.f32.mrb[8].mxu0 }
 0x1ad   :  { %v623_v20 = vadd.f32 %v1512_v18, %v399_v46  ;;  %v617_v21 = vpop.f32.mrb[9].mxu0 }
 0x1ae   :  { %v2234_v22 = vpack.c.bf16 %v743_v15, %v742_v17  ;;  %v618_v23 = vadd.f32 %v617_v21, %v394_v47 }
 0x1af   :  { %v745_v24 = vmax.f32 %v623_v20, 0.0 }
 0x1b0   :  { %v744_v25 = vmax.f32 %v618_v23, 0.0  ;;  %v1515_v26 = vpop.f32.mrb[10].mxu0 }
 0x1b1   :  { %v633_v29 = vadd.f32 %v1515_v26, %v409_v55  ;;  %v627_v30 = vpop.f32.mrb[11].mxu0 }
 0x1b2   :  { %v2238_v34 = vpack.c.bf16 %v745_v24, %v744_v25  ;;  %v628_v35 = vadd.f32 %v627_v30, %v404_v58 }
 0x1b3   :  { %v747_v39 = vmax.f32 %v633_v29, 0.0 }
 0x1b4   :  { %v746_v42 = vmax.f32 %v628_v35, 0.0  ;;  %v1518_v43 = vpop.f32.mrb[12].mxu0 }
 0x1b5   :  { %v643_v46 = vadd.f32 %v1518_v43, %v419_v16  ;;  %v637_v50 = vpop.f32.mrb[13].mxu0 }
 0x1b6   :  { %v2242_v51 = vpack.c.bf16 %v747_v39, %v746_v42  ;;  %v638_v47 = vadd.f32 %v637_v50, %v414_v19 }
 0x1b7   :  { %v749_v52 = vmax.f32 %v643_v46, 0.0 }
 0x1b8   :  { %v748_v54 = vmax.f32 %v638_v47, 0.0  ;;  %v1521_v55 = vpop.f32.mrb[14].mxu0 }
 0x1b9   :  { %v653_v57 = vadd.f32 %v1521_v55, %v429_v53  ;;  %v647_v59 = vpop.f32.mrb[15].mxu0 }
 0x1ba   :  { %v2244_v60 = vpack.c.bf16 %v749_v52, %v748_v54  ;;  %v648_v58 = vadd.f32 %v647_v59, %v424_v56 }
 0x1bb   :  { %v751_v2 = vmax.f32 %v653_v57, 0.0 }
 0x1bc   :  { %v750_v62 = vmax.f32 %v648_v58, 0.0  ;;  %v1524_v63 = vpop.f32.mrb[16].mxu0 }
 0x1bd   :  { %v663_v0 = vadd.f32 %v1524_v63, %v2197_v27  ;;  %v657_v1 = vpop.f32.mrb[17].mxu0  ;;  %v777_v63 = vld [vmem:[%s2409_s5 + $0x48] sm:$0xff] }
 0x1be   :  { %v2247_v3 = vpack.c.bf16 %v751_v2, %v750_v62  ;;  %v658_v6 = vadd.f32 %v657_v1, %v2199_v28  ;;  %v775_v2 = vld [vmem:[%s2409_s5 + $0x38] sm:$0xff]  ;;  %v774_v62 = vld [vmem:[%s2409_s5 + $0x30] sm:$0xff] }
 0x1bf   :  { %v753_v8 = vmax.f32 %v663_v0, 0.0  ;;  %v776_v0 = vld [vmem:[%s2409_s5 + $0x40] sm:$0xff]  ;;  %v779_v1 = vld [vmem:[%s2409_s5 + $0x58] sm:$0xff] }
 0x1c0   :  { %v752_v9 = vmax.f32 %v658_v6, 0.0  ;;  %v1527_v10 = vpop.f32.mrb[18].mxu0  ;;  %v781_v6 = vld [vmem:[%s2409_s5 + $0x68] sm:$0xff] }
 0x1c1   :  { %v673_v11 = vadd.f32 %v1527_v10, %v2204_v32  ;;  %v667_v12 = vpop.f32.mrb[19].mxu0  ;;  %v782_v10 = vld [vmem:[%s2409_s5 + $0x70] sm:$0xff] }
 0x1c2   :  { %v668_v14 = vadd.f32 %v667_v12, %v2206_v33  ;;  %v1622_v15 = vpack.c.bf16 %v753_v8, %v752_v9  ;;  %v780_v8 = vld [vmem:[%s2409_s5 + $0x60] sm:$0xff]  ;;  %v783_v9 = vld [vmem:[%s2409_s5 + $0x78] sm:$0xff] }
 0x1c3   :  { %v755_v16 = vmax.f32 %v673_v11, 0.0  ;;  %v785_v11 = vld [vmem:[%s2409_s5 + $0x88] sm:$0xff]  ;;  %v784_v12 = vld [vmem:[%s2409_s5 + $0x80] sm:$0xff] }
 0x1c4   :  { %v754_v17 = vmax.f32 %v668_v14, 0.0  ;;  %v1530_v18 = vpop.f32.mrb[20].mxu0  ;;  %1623 = vmatprep.subr.bf16.mxu1 %v1622_v15  ;;  %v787_v14 = vld [vmem:[%s2409_s5 + $0x98] sm:$0xff]  ;;  %v786_v15 = vld [vmem:[%s2409_s5 + $0x90] sm:$0xff] }
 0x1c5   :  { %v683_v27 = vadd.f32 %v1530_v18, %v2208_v36  ;;  %v677_v19 = vpop.f32.mrb[21].mxu0  ;;  %1625 = vmatpush3.bf16.msra.mxu1 %v2224_v61  ;;  %v791_v18 = vld [vmem:[%s2409_s5 + $0xb8] sm:$0xff] }
 0x1c6   :  { %v1626_v20 = vpack.c.bf16 %v755_v16, %v754_v17  ;;  %v678_v28 = vadd.f32 %v677_v19, %v2210_v37  ;;  %v789_v16 = vld [vmem:[%s2409_s5 + $0xa8] sm:$0xff]  ;;  %v788_v17 = vld [vmem:[%s2409_s5 + $0xa0] sm:$0xff] }
 0x1c7   :  { %v757_v21 = vmax.f32 %v683_v27, 0.0  ;;  %v790_v27 = vld [vmem:[%s2409_s5 + $0xb0] sm:$0xff]  ;;  %v793_v19 = vld [vmem:[%s2409_s5 + $0xc8] sm:$0xff] }
 0x1c8   :  { %v756_v23 = vmax.f32 %v678_v28, 0.0  ;;  %v1533_v24 = vpop.f32.mrb[22].mxu0  ;;  %1627 = vmatprep.subr.bf16.mxu1 %v1626_v20  ;;  %v792_v20 = vld [vmem:[%s2409_s5 + $0xc0] sm:$0xff]  ;;  %v795_v28 = vld [vmem:[%s2409_s5 + $0xd8] sm:$0xff] }
 0x1c9   :  { %v693_v32 = vadd.f32 %v1533_v24, %v2212_v40  ;;  %v687_v33 = vpop.f32.mrb[23].mxu0  ;;  %1629 = vmatpush3.bf16.msra.mxu1 %v2228_v5  ;;  %v796_v24 = vld [vmem:[%s2409_s5 + $0xe0] sm:$0xff] }
 0x1ca   :  { %v1630_v25 = vpack.c.bf16 %v757_v21, %v756_v23  ;;  %v688_v26 = vadd.f32 %v687_v33, %v2214_v41  ;;  %v794_v21 = vld [vmem:[%s2409_s5 + $0xd0] sm:$0xff]  ;;  %v797_v23 = vld [vmem:[%s2409_s5 + $0xe8] sm:$0xff] }
 0x1cb   :  { %v759_v29 = vmax.f32 %v693_v32, 0.0  ;;  %v799_v32 = vld [vmem:[%s2409_s5 + $0xf8] sm:$0xff]  ;;  %v798_v33 = vld [vmem:[%s2409_s5 + $0xf0] sm:$0xff] }
 0x1cc   :  { %v758_v36 = vmax.f32 %v688_v26, 0.0  ;;  %v1536_v30 = vpop.f32.mrb[24].mxu0  ;;  %1631 = vmatprep.subr.bf16.mxu1 %v1630_v25  ;;  %v1057_v25 = vld [vmem:[%s2411_s7] sm:$0xff] }
 0x1cd   :  { %v703_v61 = vadd.f32 %v1536_v30, %v2216_v44  ;;  %v697_v35 = vpop.f32.mrb[25].mxu0  ;;  %1633 = vmatpush3.bf16.msra.mxu1 %v2232_v13  ;;  %v1061_v26 = vld [vmem:[%s2411_s7 + $0x20] sm:$0xff]  ;;  %1578 = vmatprep.mubr.f32.mxu0 %v1057_v25 }
 0x1ce   :  { %v1634_v37 = vpack.c.bf16 %v759_v29, %v758_v36  ;;  %v698_v39 = vadd.f32 %v697_v35, %v2218_v45  ;;  %v819_v35 = vpop.permute.xlu0 %818 }
 0x1cf   :  { %v761_v42 = vmax.f32 %v703_v61, 0.0 }
 0x1d0   :  { %v760_v40 = vmax.f32 %v698_v39, 0.0  ;;  %v1539_v43 = vpop.f32.mrb[26].mxu0  ;;  %1635 = vmatprep.subr.bf16.mxu1 %v1634_v37 }
 0x1d1   :  { %v713_v5 = vadd.f32 %v1539_v43, %v2220_v48  ;;  %v707_v46 = vpop.f32.mrb[27].mxu0  ;;  %1637 = vmatpush3.bf16.msra.mxu1 %v2234_v22 }
 0x1d2   :  { %v1638_v41 = vpack.c.bf16 %v761_v42, %v760_v40  ;;  %v708_v50 = vadd.f32 %v707_v46, %v2222_v49  ;;  %v824_v40 = vpop.permute.xlu1 %823 }
 0x1d3   :  { %v763_v47 = vmax.f32 %v713_v5, 0.0 }
 0x1d4   :  { %v762_v44 = vmax.f32 %v708_v50, 0.0  ;;  %v1542_v52 = vpop.f32.mrb[28].mxu0  ;;  %1639 = vmatprep.subr.bf16.mxu1 %v1638_v41 }
 0x1d5   :  { %v723_v13 = vadd.f32 %v1542_v52, %v2226_v4  ;;  %v717_v53 = vpop.f32.mrb[29].mxu0  ;;  %1641 = vmatpush3.bf16.msra.mxu1 %v2238_v34 }
 0x1d6   :  { %v1642_v45 = vpack.c.bf16 %v763_v47, %v762_v44  ;;  %v718_v54 = vadd.f32 %v717_v53, %v2230_v7  ;;  %v768_v7 = vld [vmem:[%s2409_s5] sm:$0xff] }
 0x1d7   :  { %v765_v55 = vmax.f32 %v723_v13, 0.0  ;;  %v829_v13 = vpop.permute.xlu0 %828 }
 0x1d8   :  { %v764_v48 = vmax.f32 %v718_v54, 0.0  ;;  %v1545_v56 = vpop.f32.mrb[30].mxu0  ;;  %1643 = vmatprep.subr.bf16.mxu1 %v1642_v45 }
 0x1d9   :  { %v733_v22 = vadd.f32 %v1545_v56, %v2236_v31  ;;  %v727_v57 = vpop.f32.mrb[31].mxu0  ;;  %1645 = vmatpush3.bf16.msra.mxu1 %v2242_v51  ;;  %v771_v31 = vld [vmem:[%s2409_s5 + $0x18] sm:$0xff]  ;;  %v773_v51 = vld [vmem:[%s2409_s5 + $0x28] sm:$0xff] }
 0x1da   :  { %v1646_v49 = vpack.c.bf16 %v765_v55, %v764_v48  ;;  %v728_v59 = vadd.f32 %v727_v57, %v2240_v38  ;;  %v770_v38 = vld [vmem:[%s2409_s5 + $0x10] sm:$0xff]  ;;  %v834_v55 = vpop.permute.xlu1 %833 }
 0x1db   :  { %v767_v58 = vmax.f32 %v733_v22, 0.0 }
 0x1dc   :  { %v766_v4 = vmax.f32 %v728_v59, 0.0  ;;  %1647 = vmatprep.subr.bf16.mxu1 %v1646_v49 }
 0x1dd   :  { %1649 = vmatpush3.bf16.msra.mxu1 %v2244_v60  ;;  %v772_v60 = vld [vmem:[%s2409_s5 + $0x20] sm:$0xff] }
 0x1de   :  { %v1650_v34 = vpack.c.bf16 %v767_v58, %v766_v4 }
 0x1e0   :  { %1651 = vmatprep.subr.bf16.mxu1 %v1650_v34  ;;  %v839_v34 = vpop.permute.xlu0 %838 }
 0x1e1   :  { %1653 = vmatpush3.bf16.msra.mxu1 %v2247_v3  ;;  %v778_v3 = vld [vmem:[%s2409_s5 + $0x50] sm:$0xff] }
 0x1e4   :  { %961 = vmatmul.mubr.f32.vlgmr.msra.gmra.mrb[0].mxu1 %v768_v7 }
 0x1e5   :  { %965 = vmatprep.mubr.f32.mxu1 %v771_v31 }
 0x1e8   :  { %966 = vmatmul.mubr.f32.gmra.mrb[2].mxu1 %v770_v38 }
 0x1e9   :  { %970 = vmatprep.mubr.f32.mxu1 %v773_v51  ;;  %v844_v51 = vpop.permute.xlu1 %843 }
 0x1ec   :  { %971 = vmatmul.mubr.f32.gmra.mrb[4].mxu1 %v772_v60 }
 0x1ed   :  { %975 = vmatprep.mubr.f32.mxu1 %v775_v2 }
 0x1f0   :  { %976 = vmatmul.mubr.f32.gmra.mrb[6].mxu1 %v774_v62 }
 0x1f1   :  { %980 = vmatprep.mubr.f32.mxu1 %v777_v63 }
 0x1f4   :  { %981 = vmatmul.mubr.f32.gmra.mrb[8].mxu1 %v776_v0 }
 0x1f5   :  { %985 = vmatprep.mubr.f32.mxu1 %v779_v1 }
 0x1f8   :  { %986 = vmatmul.mubr.f32.gmra.mrb[10].mxu1 %v778_v3 }
 0x1f9   :  { %990 = vmatprep.mubr.f32.mxu1 %v781_v6 }
 0x1fc   :  { %991 = vmatmul.mubr.f32.gmra.mrb[12].mxu1 %v780_v8  ;;  %v849_v8 = vpop.permute.xlu0 %848 }
 0x1fd   :  { %995 = vmatprep.mubr.f32.mxu1 %v783_v9 }
 0x200   :  { %996 = vmatmul.mubr.f32.gmra.mrb[14].mxu1 %v782_v10 }
 0x201   :  { %1000 = vmatprep.mubr.f32.mxu1 %v785_v11 }
 0x204   :  { %1001 = vmatmul.mubr.f32.gmra.mrb[16].mxu1 %v784_v12  ;;  %v854_v12 = vpop.permute.xlu1 %853 }
 0x205   :  { %1005 = vmatprep.mubr.f32.mxu1 %v787_v14 }
 0x208   :  { %1006 = vmatmul.mubr.f32.gmra.mrb[18].mxu1 %v786_v15 }
 0x209   :  { %1010 = vmatprep.mubr.f32.mxu1 %v789_v16 }
 0x20c   :  { %1011 = vmatmul.mubr.f32.gmra.mrb[20].mxu1 %v788_v17 }
 0x20d   :  { %1015 = vmatprep.mubr.f32.mxu1 %v791_v18 }
 0x210   :  { %1016 = vmatmul.mubr.f32.gmra.mrb[22].mxu1 %v790_v27 }
 0x211   :  { %1020 = vmatprep.mubr.f32.mxu1 %v793_v19 }
 0x214   :  { %1021 = vmatmul.mubr.f32.gmra.mrb[24].mxu1 %v792_v20 }
 0x215   :  { %1025 = vmatprep.mubr.f32.mxu1 %v795_v28  ;;  %v859_v28 = vpop.permute.xlu0 %858 }
 0x218   :  { %1026 = vmatmul.mubr.f32.gmra.mrb[26].mxu1 %v794_v21 }
 0x219   :  { %1030 = vmatprep.mubr.f32.mxu1 %v797_v23 }
 0x21c   :  { %1031 = vmatmul.mubr.f32.gmra.mrb[28].mxu1 %v796_v24 }
 0x21d   :  { %1035 = vmatprep.mubr.f32.mxu1 %v799_v32  ;;  %v864_v32 = vpop.permute.xlu1 %863 }
 0x220   :  { %1036 = vmatmul.mubr.f32.gmra.mrb[30].mxu1 %v798_v33 }
 0x221   :  { %1584 = vmatprep.mubr.f32.mxu1 %v1061_v26 }
 0x2b7   :  { %v1394_v29 = vpop.f32.mrb[0].mxu1 }
 0x2b8   :  { %v1395_v36 = vpop.f32.mrb[1].mxu1 }
 0x2b9   :  { %v1396_v30 = vadd.f32 %v1395_v36, %v1394_v29 }
 0x2bb   :  { %v1397_v61 = vpop.f32.mrb[2].mxu1  ;;  %v963_v39 = vadd.f32 %v1396_v30, %v819_v35 }
 0x2bc   :  { %v1398_v37 = vpop.f32.mrb[3].mxu1 }
 0x2bd   :  { %v1399_v42 = vadd.f32 %v1398_v37, %v1397_v61  ;;  %v1041_v41 = vmax.f32 %v963_v39, 0.0  ;;  %v869_v37 = vpop.permute.xlu0 %868 }
 0x2bf   :  { %v968_v43 = vadd.f32 %v1399_v42, %v824_v40  ;;  %v1400_v5 = vpop.f32.mrb[4].mxu1 }
 0x2c0   :  { %v1401_v46 = vpop.f32.mrb[5].mxu1 }
 0x2c1   :  { %v1042_v50 = vmax.f32 %v968_v43, 0.0  ;;  %v1402_v47 = vadd.f32 %v1401_v46, %v1400_v5  ;;  %v874_v43 = vpop.permute.xlu1 %873 }
 0x2c3   :  { %v1654_v44 = vpack.c.bf16 %v1042_v50, %v1041_v41  ;;  %v1403_v52 = vpop.f32.mrb[6].mxu1  ;;  %v973_v45 = vadd.f32 %v1402_v47, %v829_v13 }
 0x2c4   :  { %v1404_v53 = vpop.f32.mrb[7].mxu1 }
 0x2c5   :  { %v1405_v54 = vadd.f32 %v1404_v53, %v1403_v52  ;;  %1655 = vmatprep.subr.bf16.mxu0 %v1654_v44  ;;  %1686 = vmatprep.subr.bf16.mxu1 %v1654_v44  ;;  %v1043_v57 = vmax.f32 %v973_v45, 0.0  ;;  %v879_v53 = vpop.permute.xlu0 %878 }
 0x2c6   :  { %1657 = vmatpush3.bf16.msra.mxu0 %v1654_v44  ;;  %1694 = vmatpush3.bf16.msra.mxu1 %v1654_v44 }
 0x2c7   :  { %v978_v48 = vadd.f32 %v1405_v54, %v834_v55  ;;  %v1406_v56 = vpop.f32.mrb[8].mxu1 }
 0x2c8   :  { %v1407_v22 = vpop.f32.mrb[9].mxu1 }
 0x2c9   :  { %v1044_v49 = vmax.f32 %v978_v48, 0.0  ;;  %v1408_v59 = vadd.f32 %v1407_v22, %v1406_v56  ;;  %v884_v48 = vpop.permute.xlu1 %883 }
 0x2cb   :  { %v1658_v58 = vpack.c.bf16 %v1044_v49, %v1043_v57  ;;  %v1409_v4 = vpop.f32.mrb[10].mxu1  ;;  %v983_v31 = vadd.f32 %v1408_v59, %v839_v34 }
 0x2cc   :  { %v1410_v7 = vpop.f32.mrb[11].mxu1 }
 0x2cd   :  { %v1411_v38 = vadd.f32 %v1410_v7, %v1409_v4  ;;  %1659 = vmatprep.subr.bf16.mxu0 %v1658_v58  ;;  %1687 = vmatprep.subr.bf16.mxu1 %v1658_v58  ;;  %v1045_v63 = vmax.f32 %v983_v31, 0.0  ;;  %v889_v7 = vpop.permute.xlu0 %888 }
 0x2ce   :  { %1661 = vmatpush3.bf16.msra.mxu0 %v1658_v58  ;;  %1695 = vmatpush3.bf16.msra.mxu1 %v1658_v58 }
 0x2cf   :  { %v988_v60 = vadd.f32 %v1411_v38, %v844_v51  ;;  %v1412_v2 = vpop.f32.mrb[12].mxu1 }
 0x2d0   :  { %v1413_v62 = vpop.f32.mrb[13].mxu1 }
 0x2d1   :  { %v1046_v0 = vmax.f32 %v988_v60, 0.0  ;;  %v1414_v1 = vadd.f32 %v1413_v62, %v1412_v2  ;;  %v894_v60 = vpop.permute.xlu1 %893 }
 0x2d3   :  { %v1662_v3 = vpack.c.bf16 %v1046_v0, %v1045_v63  ;;  %v1415_v6 = vpop.f32.mrb[14].mxu1  ;;  %v993_v10 = vadd.f32 %v1414_v1, %v849_v8  ;;  %v1058_v1 = vld [vmem:[%s2411_s7 + $0x8] sm:$0xff]  ;;  %v1063_v8 = vld [vmem:[%s2411_s7 + $0x30] sm:$0xff] }
 0x2d4   :  { %v1416_v9 = vpop.f32.mrb[15].mxu1 }
 0x2d5   :  { %v1417_v11 = vadd.f32 %v1416_v9, %v1415_v6  ;;  %1663 = vmatprep.subr.bf16.mxu0 %v1662_v3  ;;  %1688 = vmatprep.subr.bf16.mxu1 %v1662_v3  ;;  %v1047_v17 = vmax.f32 %v993_v10, 0.0  ;;  %v1059_v6 = vld [vmem:[%s2411_s7 + $0x10] sm:$0xff]  ;;  %v1060_v9 = vld [vmem:[%s2411_s7 + $0x18] sm:$0xff] }
 0x2d6   :  { %1665 = vmatpush3.bf16.msra.mxu0 %v1662_v3  ;;  %1696 = vmatpush3.bf16.msra.mxu1 %v1662_v3  ;;  %v1062_v3 = vld [vmem:[%s2411_s7 + $0x28] sm:$0xff]  ;;  %v1064_v10 = vld [vmem:[%s2411_s7 + $0x38] sm:$0xff] }
 0x2d7   :  { %v998_v14 = vadd.f32 %v1417_v11, %v854_v12  ;;  %v1418_v15 = vpop.f32.mrb[16].mxu1  ;;  %v1076_v11 = vpop.permute.xlu0 %1075 }
 0x2d8   :  { %v1419_v16 = vpop.f32.mrb[17].mxu1  ;;  %v1081_v12 = vpop.permute.xlu1 %1080 }
 0x2d9   :  { %v1048_v18 = vmax.f32 %v998_v14, 0.0  ;;  %v1420_v27 = vadd.f32 %v1419_v16, %v1418_v15 }
 0x2db   :  { %v1666_v19 = vpack.c.bf16 %v1048_v18, %v1047_v17  ;;  %v1421_v20 = vpop.f32.mrb[18].mxu1  ;;  %v1003_v23 = vadd.f32 %v1420_v27, %v859_v28  ;;  %v1086_v14 = vpop.permute.xlu0 %1085 }
 0x2dc   :  { %v1422_v21 = vpop.f32.mrb[19].mxu1  ;;  %v1091_v15 = vpop.permute.xlu1 %1090 }
 0x2dd   :  { %v1423_v24 = vadd.f32 %v1422_v21, %v1421_v20  ;;  %1667 = vmatprep.subr.bf16.mxu0 %v1666_v19  ;;  %1689 = vmatprep.subr.bf16.mxu1 %v1666_v19  ;;  %v1049_v29 = vmax.f32 %v1003_v23, 0.0 }
 0x2de   :  { %1669 = vmatpush3.bf16.msra.mxu0 %v1666_v19  ;;  %1697 = vmatpush3.bf16.msra.mxu1 %v1666_v19 }
 0x2df   :  { %v1008_v33 = vadd.f32 %v1423_v24, %v864_v32  ;;  %v1424_v25 = vpop.f32.mrb[20].mxu1  ;;  %v1237_v16 = vpop.permute.xlu0 %1236 }
 0x2e0   :  { %v1425_v26 = vpop.f32.mrb[21].mxu1  ;;  %v1242_v17 = vpop.permute.xlu1 %1241 }
 0x2e1   :  { %v1050_v36 = vmax.f32 %v1008_v33, 0.0  ;;  %v1426_v30 = vadd.f32 %v1425_v26, %v1424_v25 }
 0x2e3   :  { %v1670_v61 = vpack.c.bf16 %v1050_v36, %v1049_v29  ;;  %v1427_v35 = vpop.f32.mrb[22].mxu1  ;;  %v1013_v42 = vadd.f32 %v1426_v30, %v869_v37  ;;  %v1096_v18 = vpop.permute.xlu0 %1095 }
 0x2e4   :  { %v1428_v39 = vpop.f32.mrb[23].mxu1  ;;  %v1247_v27 = vpop.permute.xlu1 %1246 }
 0x2e5   :  { %v1429_v40 = vadd.f32 %v1428_v39, %v1427_v35  ;;  %1671 = vmatprep.subr.bf16.mxu0 %v1670_v61  ;;  %1690 = vmatprep.subr.bf16.mxu1 %v1670_v61  ;;  %v1051_v50 = vmax.f32 %v1013_v42, 0.0 }
 0x2e6   :  { %1673 = vmatpush3.bf16.msra.mxu0 %v1670_v61  ;;  %1698 = vmatpush3.bf16.msra.mxu1 %v1670_v61 }
 0x2e7   :  { %v1018_v5 = vadd.f32 %v1429_v40, %v874_v43  ;;  %v1430_v46 = vpop.f32.mrb[24].mxu1  ;;  %v1101_v19 = vpop.permute.xlu0 %1100 }
 0x2e8   :  { %v1431_v41 = vpop.f32.mrb[25].mxu1  ;;  %v1252_v20 = vpop.permute.xlu1 %1251 }
 0x2e9   :  { %v1052_v47 = vmax.f32 %v1018_v5, 0.0  ;;  %v1432_v44 = vadd.f32 %v1431_v41, %v1430_v46 }
 0x2eb   :  { %v1674_v52 = vpack.c.bf16 %v1052_v47, %v1051_v50  ;;  %v1433_v13 = vpop.f32.mrb[26].mxu1  ;;  %v1023_v54 = vadd.f32 %v1432_v44, %v879_v53  ;;  %v1106_v25 = vpop.permute.xlu0 %1105 }
 0x2ec   :  { %v1434_v45 = vpop.f32.mrb[27].mxu1  ;;  %v1257_v5 = vpop.permute.xlu1 %1256 }
 0x2ed   :  { %v1435_v55 = vadd.f32 %v1434_v45, %v1433_v13  ;;  %1675 = vmatprep.subr.bf16.mxu0 %v1674_v52  ;;  %1691 = vmatprep.subr.bf16.mxu1 %v1674_v52  ;;  %v1053_v49 = vmax.f32 %v1023_v54, 0.0 }
 0x2ee   :  { %1677 = vmatpush3.bf16.msra.mxu0 %v1674_v52  ;;  %1699 = vmatpush3.bf16.msra.mxu1 %v1674_v52 }
 0x2ef   :  { %v1028_v56 = vadd.f32 %v1435_v55, %v884_v48  ;;  %v1436_v22 = vpop.f32.mrb[28].mxu1  ;;  %v1111_v53 = vpop.permute.xlu0 %1110 }
 0x2f0   :  { %v1437_v57 = vpop.f32.mrb[29].mxu1 }
 0x2f1   :  { %v1054_v59 = vmax.f32 %v1028_v56, 0.0  ;;  %v1438_v58 = vadd.f32 %v1437_v57, %v1436_v22  ;;  %v1262_v56 = vpop.permute.xlu1 %1261 }
 0x2f3   :  { %v1678_v4 = vpack.c.bf16 %v1054_v59, %v1053_v49  ;;  %v1439_v34 = vpop.f32.mrb[30].mxu1  ;;  %v1033_v38 = vadd.f32 %v1438_v58, %v889_v7 }
 0x2f4   :  { %v1440_v31 = vpop.f32.mrb[31].mxu1 }
 0x2f5   :  { %v1441_v51 = vadd.f32 %v1440_v31, %v1439_v34  ;;  %1679 = vmatprep.subr.bf16.mxu0 %v1678_v4  ;;  %1692 = vmatprep.subr.bf16.mxu1 %v1678_v4  ;;  %v1055_v62 = vmax.f32 %v1033_v38, 0.0  ;;  %v1267_v34 = vpop.permute.xlu0 %1266  ;;  %v1272_v38 = vpop.permute.xlu1 %1271 }
 0x2f6   :  { %1681 = vmatpush3.bf16.msra.mxu0 %v1678_v4  ;;  %1700 = vmatpush3.bf16.msra.mxu1 %v1678_v4 }
 0x2f7   :  { %v1038_v2 = vadd.f32 %v1441_v51, %v894_v60 }
 0x2f9   :  { %v1056_v63 = vmax.f32 %v1038_v2, 0.0 }
 0x2fb   :  { %v1682_v0 = vpack.c.bf16 %v1056_v63, %v1055_v62 }
 0x2fd   :  { %1683 = vmatprep.subr.bf16.mxu0 %v1682_v0  ;;  %1693 = vmatprep.subr.bf16.mxu1 %v1682_v0 }
 0x2fe   :  { %1685 = vmatpush3.bf16.msra.mxu0 %v1682_v0  ;;  %1701 = vmatpush3.bf16.msra.mxu1 %v1682_v0 }
 0x301   :  { %1579 = vmatmul.mubr.f32.vlgmr.msra.gmra.mrb[32].mxu0 %v1058_v1  ;;  %1585 = vmatmul.mubr.f32.vlgmr.msra.gmra.mrb[32].mxu1 %v1062_v3 }
 0x302   :  { %1581 = vmatprep.mubr.f32.mxu0 %v1059_v6  ;;  %1587 = vmatprep.mubr.f32.mxu1 %v1063_v8  ;;  %v1296_v6 = vstv %s2414_s10 }
 0x305   :  { %1582 = vmatmul.mubr.f32.gmra.mrb[34].mxu0 %v1060_v9  ;;  %1588 = vmatmul.mubr.f32.gmra.mrb[34].mxu1 %v1064_v10 }
 0x3d4   :  { %v1580_v28 = vpop.f32.mrb[32].mxu0  ;;  %v1586_v21 = vpop.f32.mrb[32].mxu1 }
 0x3d5   :  { %v1185_v23 = vadd.f32 %v1580_v28, %v1081_v12  ;;  %v1179_v24 = vpop.f32.mrb[33].mxu0  ;;  %v1199_v32 = vpop.f32.mrb[33].mxu1  ;;  %v1205_v46 = vadd.f32 %v1586_v21, %v1101_v19 }
 0x3d6   :  { %v1180_v33 = vadd.f32 %v1179_v24, %v1076_v11  ;;  %v1200_v40 = vadd.f32 %v1199_v32, %v1096_v18 }
 0x3d7   :  { %v1219_v26 = vmax.f32 %v1185_v23, 0.0  ;;  %v1223_v45 = vmax.f32 %v1205_v46, 0.0 }
 0x3d8   :  { %v1218_v29 = vmax.f32 %v1180_v33, 0.0  ;;  %v1583_v36 = vpop.f32.mrb[34].mxu0  ;;  %v1589_v30 = vpop.f32.mrb[34].mxu1  ;;  %v1222_v44 = vmax.f32 %v1200_v40, 0.0 }
 0x3d9   :  { %v1275_v61 = vmul.f32 %v1242_v17, %v1219_v26  ;;  %v1195_v35 = vadd.f32 %v1583_v36, %v1091_v15  ;;  %v1189_v37 = vpop.f32.mrb[35].mxu0  ;;  %v1209_v39 = vpop.f32.mrb[35].mxu1  ;;  %v1215_v55 = vadd.f32 %v1589_v30, %v1111_v53  ;;  %v1279_v59 = vmul.f32 %v1262_v56, %v1223_v45 }
 0x3da   :  { %v1274_v42 = vmul.f32 %v1237_v16, %v1218_v29  ;;  %v1190_v43 = vadd.f32 %v1189_v37, %v1086_v14  ;;  %v1210_v13 = vadd.f32 %v1209_v39, %v1106_v25  ;;  %v1278_v22 = vmul.f32 %v1257_v5, %v1222_v44 }
 0x3db   :  { %v1221_v50 = vmax.f32 %v1195_v35, 0.0  ;;  %v1225_v58 = vmax.f32 %v1215_v55, 0.0 }
 0x3dc   :  { %v1282_v41 = vadd.f32 %v1275_v61, %v1274_v42  ;;  %v1220_v47 = vmax.f32 %v1190_v43, 0.0  ;;  %v1224_v49 = vmax.f32 %v1210_v13, 0.0 }
 0x3dd   :  { %v1277_v54 = vmul.f32 %v1252_v20, %v1221_v50  ;;  %v1281_v51 = vmul.f32 %v1272_v38, %v1225_v58 }
 0x3de   :  { %v1276_v52 = vmul.f32 %v1247_v27, %v1220_v47  ;;  %v1280_v7 = vmul.f32 %v1267_v34, %v1224_v49 }
 0x3e0   :  { %v1283_v48 = vadd.f32 %v1282_v41, %v1276_v52 }
 0x3e2   :  { %v1284_v57 = vadd.f32 %v1283_v48, %v1277_v54 }
 0x3e4   :  { %v1285_v4 = vadd.f32 %v1284_v57, %v1278_v22 }
 0x3e6   :  { %v1286_v31 = vadd.f32 %v1285_v4, %v1279_v59 }
 0x3e8   :  { %v1287_v60 = vadd.f32 %v1286_v31, %v1280_v7 }
 0x3ea   :  { %v1288_v2 = vadd.f32 %v1287_v60, %v1281_v51 }
 0x3ec   :  { %v1289_v62 = vrot.slane %v1288_v2, 4 }
 0x3ee   :  { %v1290_v63 = vadd.f32 %v1289_v62, %v1288_v2 }
 0x3f0   :  { %v1291_v0 = vrot.slane %v1290_v63, 2 }
 0x3f2   :  { %v1292_v1 = vadd.f32 %v1291_v0, %v1290_v63 }
 0x3f4   :  { %v1293_v3 = vrot.slane %v1292_v1, 1 }
 0x3f6   :  { %v1294_v8 = vadd.f32 %v1293_v3, %v1292_v1 }
 0x3f8   :  { %v1297_v9 = vadd.f32 %v1296_v6, %v1294_v8 }
 0x3fa   :  { %1298 = vst [vmem:[#allocation3] sm:$0x1] %v1297_v9 }
 0x3fb   :  { %1717 = shalt.err (!%p1714_p4)
}
 0x3fc   :  { %s1718_s12 = scalar_lea.hbm %s2415_s11, 16 }
 0x3fd   :  { %p1719_p5 = scmp.ne.s32.totalorder %s2415_s11, %s1718_s12  ;;  %p1722_p6 = scmp.lt.u32.totalorder %s1718_s12, %s2415_s11 }
 0x3ff   :  { %p1724_p7 = pnand %p1722_p6, %p1719_p5 }
 0x401   :  { %1727 = shalt.err (!%p1724_p7)
}
 0x402   :  { %1308 = dma.vmem_to_hbm [thread:$0]  %s1306_s29, 16, %s2415_s11, [#allocation4]  }
 0x403   :  { %1728 = dma.done.wait [#allocation4], 16  }
 0x404   :  { %1729 = vsyncadd [#allocation4], 4294967280 }
 0x405   :  { %1312 = vsyncpa [#allocation4], 1 }

</bundles_post_ra>
